<compile_context>
chip_gen: v7x
topology: tpu7x:2x2x1
jax: 0.10.0
libtpu: 0.0.40
codegen_flags: <defaults>
</compile_context>

<pallas_src>
import jax
import jax.numpy as jnp
from jax.experimental import pallas as pl
from jax.experimental.pallas import tpu as pltpu


def _round_up(x, m):
    return (x + m - 1) // m * m


def mlp_softmax_kernel(x_ref, w1_ref, b1_ref, w2_ref, b2_ref, o_ref):
    """Fused fc1 -> ReLU -> fc2 -> softmax(dim=1) for one batch tile.

    x_ref : (TB, IN)    input tile (cast to MXU dtype in-register if needed)
    w1_ref: (IN, HID)   fc1 weight, pre-transposed, MXU dtype (bf16)
    b1_ref: (1, HID)    fc1 bias (f32)
    w2_ref: (HID, OUT)  fc2 weight, pre-transposed, MXU dtype (bf16)
    b2_ref: (1, OUT)    fc2 bias (f32)
    o_ref : (TB, OUT)   probabilities (f32), only real columns — no padding
    """
    mxu_dtype = w1_ref.dtype
    x = x_ref[...]
    if x.dtype != mxu_dtype:
        x = x.astype(mxu_dtype)

    # fc1 + ReLU: MXU matmul with f32 accumulation, bias/ReLU on the VPU in f32.
    h = jnp.dot(x, w1_ref[...], preferred_element_type=jnp.float32)
    h = jnp.maximum(h + b1_ref[...], 0.0)

    # fc2
    logits = jnp.dot(h.astype(w2_ref.dtype), w2_ref[...],
                     preferred_element_type=jnp.float32)
    logits = logits + b2_ref[...]

    # Numerically stable softmax over the last (lane) axis == torch dim=1.
    m = jnp.max(logits, axis=-1, keepdims=True)
    e = jnp.exp(logits - m)
    denom = jnp.sum(e, axis=-1, keepdims=True)
    # Exact reciprocal: latency hides under the HBM-bound pipeline and rows
    # sum to 1 to f32 precision.
    o_ref[...] = (e * pl.reciprocal(denom, approx=False)).astype(o_ref.dtype)


def prepare_params(w1, b1, w2, b2, matmul_dtype=jnp.bfloat16):
    """One-time parameter prep (do this at init time, NOT per forward call).

    w1: (hidden, in), b1: (hidden,), w2: (out, hidden), b2: (out,)
    Returns weights pre-transposed to (in, hidden) / (hidden, out) in the MXU
    dtype and biases reshaped to (1, dim) in f32.
    """
    w1t = jnp.asarray(w1, matmul_dtype).T            # (in, hidden)
    w2t = jnp.asarray(w2, matmul_dtype).T            # (hidden, out)
    b1r = jnp.asarray(b1, jnp.float32).reshape(1, -1)
    b2r = jnp.asarray(b2, jnp.float32).reshape(1, -1)
    return w1t, b1r, w2t, b2r


def multiclass_nn_forward(x, params, *, block_b=4096):
    """Forward pass of MulticlassNeuralNetwork.

    x: (B, in). params: output of prepare_params(). Returns (B, out) f32
    probabilities (softmax over dim=1), matching the PyTorch module.
    """
    w1t, b1, w2t, b2 = params
    B, in_dim = x.shape
    hidden = w1t.shape[1]
    out_dim = w2t.shape[1]

    # Batch tile: multiple of 8 sublanes, as large as block_b, but capped so
    # the grid keeps >= 4 steps when B allows (v7x megacore + pipelining).
    tb_cap = _round_up(pl.cdiv(B, 4), 8)
    tb = max(8, min(_round_up(block_b, 8), tb_cap, _round_up(B, 8)))
    grid = (pl.cdiv(B, tb),)

    x_bytes = jnp.dtype(x.dtype).itemsize
    w_bytes = jnp.dtype(w1t.dtype).itemsize

    # Double-buffered x/out tiles + resident weights/biases (+ slack).
    step_bytes = 2 * tb * (in_dim * x_bytes + out_dim * 4)
    resident_bytes = (w1t.size + w2t.size) * w_bytes + (b1.size + b2.size) * 4
    vmem_limit = int(max(step_bytes + resident_bytes + (4 << 20), 16 << 20))

    cost = pl.CostEstimate(
        flops=2 * B * (in_dim * hidden + hidden * out_dim),
        transcendentals=B * out_dim,
        bytes_accessed=(B * in_dim * x_bytes + resident_bytes + B * out_dim * 4),
    )

    return pl.pallas_call(
        mlp_softmax_kernel,
        out_shape=jax.ShapeDtypeStruct((B, out_dim), jnp.float32),
        grid_spec=pltpu.PrefetchScalarGridSpec(
            num_scalar_prefetch=0,
            grid=grid,
            in_specs=[
                pl.BlockSpec((tb, in_dim), lambda i: (i, 0)),      # x: batch-tiled
                pl.BlockSpec((in_dim, hidden), lambda i: (0, 0)),  # w1t: resident
                pl.BlockSpec((1, hidden), lambda i: (0, 0)),       # b1: resident
                pl.BlockSpec((hidden, out_dim), lambda i: (0, 0)), # w2t: resident
                pl.BlockSpec((1, out_dim), lambda i: (0, 0)),      # b2: resident
            ],
            out_specs=pl.BlockSpec((tb, out_dim), lambda i: (i, 0)),
        ),
        compiler_params=pltpu.CompilerParams(
            dimension_semantics=("parallel",),   # megacore split on v7x
            vmem_limit_bytes=vmem_limit,
        ),
        cost_estimate=cost,
    )(x, w1t, b1, w2t, b2)


def reference_forward(x, w1, b1, w2, b2, matmul_dtype=jnp.float32):
    md = matmul_dtype
    h = jnp.dot(x.astype(md), w1.astype(md).T,
                preferred_element_type=jnp.float32) + b1
    h = jnp.maximum(h, 0.0)
    logits = jnp.dot(h.astype(md), w2.astype(md).T,
                     preferred_element_type=jnp.float32) + b2
    return jax.nn.softmax(logits, axis=1)


if __name__ == "__main__":
    # Small shapes consistent with the module: x is (batch, input_size).
    # batch=512 with the tb cap gives a 4-step batch grid (pipelining + both
    # v7x TensorCores exercised).
    batch, input_size, hidden_size, output_size = 512, 32, 32, 8

    key = jax.random.PRNGKey(0)
    kx, k1, kb1, k2, kb2 = jax.random.split(key, 5)

    x = jax.random.normal(kx, (batch, input_size), dtype=jnp.float32)

    # Deterministic parameter init (PyTorch-style uniform bounds).
    bound1 = 1.0 / jnp.sqrt(input_size)
    bound2 = 1.0 / jnp.sqrt(hidden_size)
    w1 = jax.random.uniform(k1, (hidden_size, input_size), jnp.float32, -bound1, bound1)
    b1 = jax.random.uniform(kb1, (hidden_size,), jnp.float32, -bound1, bound1)
    w2 = jax.random.uniform(k2, (output_size, hidden_size), jnp.float32, -bound2, bound2)
    b2 = jax.random.uniform(kb2, (output_size,), jnp.float32, -bound2, bound2)

    # One-time parameter prep (hoisted out of the forward path).
    params = prepare_params(w1, b1, w2, b2, matmul_dtype=jnp.bfloat16)

    out = multiclass_nn_forward(x, params)
    out = jax.block_until_ready(out)
    assert out.shape == (batch, output_size)

    # Tight check vs a reference that mirrors the bf16-at-the-MXU policy.
    ref_bf16 = reference_forward(x, w1, b1, w2, b2, jnp.bfloat16)
    assert jnp.allclose(out, ref_bf16, atol=5e-3, rtol=5e-3), "mismatch vs bf16 ref"

    # Loose sanity check vs the pure-f32 reference (bf16 MXU delta only).
    ref_f32 = reference_forward(x, w1, b1, w2, b2, jnp.float32)
    assert jnp.allclose(out, ref_f32, atol=5e-2, rtol=5e-2), "mismatch vs f32 ref"

    # Exact reciprocal => rows sum to 1 to f32 precision.
    assert jnp.allclose(jnp.sum(out, axis=1), 1.0, atol=1e-5), "rows must sum to ~1"

    # TODO(synk): fit/predict/predict_proba are host-side training/inference
    # drivers around forward(); only the forward pass is implemented here.

    print("KERNEL_OK")
</pallas_src>

<mosaic_0001>
module attributes {stable_mosaic.version = 11 : i64} {
  func.func @mlp_softmax_kernel(%arg0: i32, %arg1: memref<128x32xf32, #tpu.memory_space<vmem>>, %arg2: memref<32x32xbf16, #tpu.memory_space<vmem>>, %arg3: memref<1x32xf32, #tpu.memory_space<vmem>>, %arg4: memref<32x8xbf16, #tpu.memory_space<vmem>>, %arg5: memref<1x8xf32, #tpu.memory_space<vmem>>, %arg6: memref<128x8xf32, #tpu.memory_space<vmem>>) attributes {dimension_semantics = [#tpu.dimension_semantics<parallel>], iteration_bounds = array<i64: 4>, scalar_prefetch = 0 : i64, scratch_operands = 0 : i64, tpu.core_type = #tpu.core_type<tc>, window_params = [{transform_indices = @transform_0, window_bounds = array<i64: 128, 32>}, {pipeline_mode = #tpu.pipeline_mode<synchronous>, transform_indices = @transform_1, window_bounds = array<i64: 32, 32>}, {pipeline_mode = #tpu.pipeline_mode<synchronous>, transform_indices = @transform_2, window_bounds = array<i64: 1, 32>}, {pipeline_mode = #tpu.pipeline_mode<synchronous>, transform_indices = @transform_3, window_bounds = array<i64: 32, 8>}, {pipeline_mode = #tpu.pipeline_mode<synchronous>, transform_indices = @transform_4, window_bounds = array<i64: 1, 8>}, {transform_indices = @transform_5, window_bounds = array<i64: 128, 8>}]} {
    %c0 = arith.constant 0 : index
    %c0_0 = arith.constant 0 : index
    %0 = vector.load %arg1[%c0, %c0_0] : memref<128x32xf32, #tpu.memory_space<vmem>>, vector<128x32xf32>
    %1 = arith.truncf %0 : vector<128x32xf32> to vector<128x32xbf16>
    %c0_1 = arith.constant 0 : index
    %c0_2 = arith.constant 0 : index
    %2 = vector.load %arg2[%c0_1, %c0_2] : memref<32x32xbf16, #tpu.memory_space<vmem>>, vector<32x32xbf16>
    %cst = arith.constant dense<0.000000e+00> : vector<128x32xf32>
    %3 = tpu.matmul %1, %2, %cst {dimension_numbers = #tpu.dot_dimension_numbers<[1], [0], [0], [1], [0, 0, 1, 1], [], []>} : vector<128x32xbf16>, vector<32x32xbf16>, vector<128x32xf32> -> vector<128x32xf32>
    %c0_3 = arith.constant 0 : index
    %c0_4 = arith.constant 0 : index
    %4 = vector.load %arg3[%c0_3, %c0_4] : memref<1x32xf32, #tpu.memory_space<vmem>>, vector<1x32xf32>
    %5 = vector.broadcast %4 : vector<1x32xf32> to vector<128x32xf32>
    %6 = arith.addf %3, %5 : vector<128x32xf32>
    %cst_5 = arith.constant 0.000000e+00 : f32
    %7 = vector.broadcast %cst_5 : f32 to vector<128x32xf32>
    %8 = arith.maximumf %6, %7 : vector<128x32xf32>
    %9 = arith.truncf %8 : vector<128x32xf32> to vector<128x32xbf16>
    %c0_6 = arith.constant 0 : index
    %c0_7 = arith.constant 0 : index
    %10 = vector.load %arg4[%c0_6, %c0_7] : memref<32x8xbf16, #tpu.memory_space<vmem>>, vector<32x8xbf16>
    %cst_8 = arith.constant dense<0.000000e+00> : vector<128x8xf32>
    %11 = tpu.matmul %9, %10, %cst_8 {dimension_numbers = #tpu.dot_dimension_numbers<[1], [0], [0], [1], [0, 0, 1, 1], [], []>} : vector<128x32xbf16>, vector<32x8xbf16>, vector<128x8xf32> -> vector<128x8xf32>
    %c0_9 = arith.constant 0 : index
    %c0_10 = arith.constant 0 : index
    %12 = vector.load %arg5[%c0_9, %c0_10] : memref<1x8xf32, #tpu.memory_space<vmem>>, vector<1x8xf32>
    %13 = vector.broadcast %12 : vector<1x8xf32> to vector<128x8xf32>
    %14 = arith.addf %11, %13 : vector<128x8xf32>
    %cst_11 = arith.constant dense<0xFF800000> : vector<128xf32>
    %15 = vector.multi_reduction <maximumf>, %14, %cst_11 [1] : vector<128x8xf32> to vector<128xf32>
    %16 = vector.shape_cast %15 : vector<128xf32> to vector<128x1xf32>
    %17 = vector.broadcast %16 : vector<128x1xf32> to vector<128x8xf32>
    %18 = arith.subf %14, %17 : vector<128x8xf32>
    %19 = math.exp %18 : vector<128x8xf32>
    %cst_12 = arith.constant dense<0.000000e+00> : vector<128xf32>
    %20 = vector.multi_reduction <add>, %19, %cst_12 [1] : vector<128x8xf32> to vector<128xf32>
    %21 = vector.shape_cast %20 : vector<128xf32> to vector<128x1xf32>
    %22 = tpu.reciprocal %21 : vector<128x1xf32> -> vector<128x1xf32>
    %23 = vector.broadcast %22 : vector<128x1xf32> to vector<128x8xf32>
    %24 = arith.mulf %19, %23 : vector<128x8xf32>
    %c0_13 = arith.constant 0 : index
    %c0_14 = arith.constant 0 : index
    %25 = vector.load %arg6[%c0_13, %c0_14] : memref<128x8xf32, #tpu.memory_space<vmem>>, vector<128x8xf32>
    tpu.vector_store %arg6[%c0_13, %c0_14], %24 {strides = array<i32>} : memref<128x8xf32, #tpu.memory_space<vmem>>, vector<128x8xf32>,
    return
  }
  func.func @transform_0(%arg0: i32) -> (i32, i32) {
    %c0_i32 = arith.constant 0 : i32
    %c0_i32_0 = arith.constant 0 : i32
    return %arg0, %c0_i32 : i32, i32
  }
  func.func @transform_1(%arg0: i32) -> (i32, i32) {
    %c0_i32 = arith.constant 0 : i32
    %c0_i32_0 = arith.constant 0 : i32
    %c0_i32_1 = arith.constant 0 : i32
    return %c0_i32, %c0_i32_0 : i32, i32
  }
  func.func @transform_2(%arg0: i32) -> (i32, i32) {
    %c0_i32 = arith.constant 0 : i32
    %c0_i32_0 = arith.constant 0 : i32
    %c0_i32_1 = arith.constant 0 : i32
    return %c0_i32, %c0_i32_0 : i32, i32
  }
  func.func @transform_3(%arg0: i32) -> (i32, i32) {
    %c0_i32 = arith.constant 0 : i32
    %c0_i32_0 = arith.constant 0 : i32
    %c0_i32_1 = arith.constant 0 : i32
    return %c0_i32, %c0_i32_0 : i32, i32
  }
  func.func @transform_4(%arg0: i32) -> (i32, i32) {
    %c0_i32 = arith.constant 0 : i32
    %c0_i32_0 = arith.constant 0 : i32
    %c0_i32_1 = arith.constant 0 : i32
    return %c0_i32, %c0_i32_0 : i32, i32
  }
  func.func @transform_5(%arg0: i32) -> (i32, i32) {
    %c0_i32 = arith.constant 0 : i32
    %c0_i32_0 = arith.constant 0 : i32
    return %arg0, %c0_i32 : i32, i32
  }
}

</mosaic_0001>

<bundles_post_ra>
// kernel: tpu_custom_call.1
= control target key start
LH: loop header
LB: loop body
LE: loop exit
PB: predicated region body
PF: predicated region fallthrough
CT: control target
= control target key end

     0   :  { %s1022_s18 = smov 0   ;;  %s1292_s0 = inlined_call_operand.vmem [shape: f32[512,32], index: 0, kind: input, shape index: {}]   ;;  %s1293_s1 = inlined_call_operand.vmem [shape: bf16[32,32], index: 1, kind: input, shape index: {}]   ;;  %s1294_s2 = inlined_call_operand.vmem [shape: f32[1,32], index: 2, kind: input, shape index: {}]   ;;  %s1295_s3 = inlined_call_operand.vmem [shape: bf16[32,8], index: 3, kind: input, shape index: {}]   ;;  %s1296_s4 = inlined_call_operand.vmem [shape: f32[1,8], index: 4, kind: input, shape index: {}]   ;;  %s1297_s5 = inlined_call_operand.vmem [shape: f32[512,8], index: 5, kind: output, shape index: {}]  }
   0x1 LB: > { %s815_s19 = sadd.s32 4294967295, %s990_s18   ;;  %p819_p0 = scmp.ge.s32.totalorder %s990_s18, 1  ;;  %s990_s18 = sphi %s1022_s18, %s15_s18  }
   0x2   : > { %p188_p1 = scmp.lt.s32.totalorder %s990_s18, 5 }
   0x4   : > { %p189_p2 = pnand %p819_p0, %p188_p1 }
   0x5   : > { %v916_v0 = vld [vmem:[%s1293_s1] sm:$0xff] (!%p189_p2)   ;;  %s820_s22 = sshll.u32 (!%p189_p2), %s815_s19, 4  ;;  %v917_v1 = vld [vmem:[%s1293_s1 + $0x8] sm:$0xff] (!%p189_p2)   ;;  %vm276_vm0 = vcmask (!%p189_p2), 261120   ;;  %vm566_vm1 = vcmask (!%p189_p2), 64512  }
   0x6   : > { %192 = sbr.rel (%p189_p2) target bundleno = 803 (0x323), region = 40  ;;  %p217_p3 = scmp.lt.s32.totalorder (!%p189_p2), %s820_s22, 63  ;;  %868 = vmatprep.subr.bf16.mxu0 (!%p189_p2), %v916_v0  ;;  %v918_v26 = vld [vmem:[%s1295_s3] sm:$0xff] (!%p189_p2)   ;;  %v919_v27 = vld [vmem:[%s1295_s3 + $0x8] sm:$0xff] (!%p189_p2)  }
   0x7   : > { %869 = vmatpush3.bf16.msra.mxu0 (!%p189_p2), %v916_v0  ;;  %888 = vmatprep.subr.bf16.mxu1 (!%p189_p2), %v918_v26  ;;  %v824_v28 = vld [vmem:[%s1294_s2] ss:$0 sm:$0xff] (!%p189_p2) }
   0x8   : > { %870 = vmatprep.subr.bf16.mxu0 (!%p189_p2), %v917_v1  ;;  %889 = vmatpush3.bf16.msra.mxu1 (!%p189_p2), %v918_v26 }
   0x9   : > { %890 = vmatprep.subr.bf16.mxu1 (!%p189_p2), %v919_v27 }
   0xb   : > { %871 = vmatpush3.bf16.msra.mxu0 (!%p189_p2), %v917_v1 }
   0xc   : > { %891 = vmatpush3.bf16.msra.mxu1 (!%p189_p2), %v919_v27 }
   0xd   : > { %s1299_s22 = smov (!%p217_p3, %s820_s22), 63 }
   0xe   : > { %s821_s25 = sshll.u32 %s1299_s22, 3 }
   0xf   : > { %s1044_s28 = scalar_lea.vmem %s1292_s0, %s821_s25  ;;  %s1239_s14 = scalar_lea.vmem %s1297_s5, %s821_s25 }
  0x10   : > { %v229_v2 = vld [vmem:[%s1044_s28] sm:$0xff]  ;;  %v230_v3 = vld [vmem:[%s1044_s28 + $0x8] sm:$0xff]  ;;  %v231_v4 = vld [vmem:[%s1044_s28 + $0x10] sm:$0xff] }
  0x11   : > { %v245_v5 = vpack.c.bf16 %v230_v3, %v229_v2  ;;  %v232_v6 = vld [vmem:[%s1044_s28 + $0x18] sm:$0xff]  ;;  %v233_v7 = vld [vmem:[%s1044_s28 + $0x20] sm:$0xff]  ;;  %v234_v8 = vld [vmem:[%s1044_s28 + $0x28] sm:$0xff] }
  0x12   : > { %v246_v9 = vpack.c.bf16 %v232_v6, %v231_v4  ;;  %v247_v10 = vpack.c.bf16 %v234_v8, %v233_v7  ;;  %v235_v11 = vld [vmem:[%s1044_s28 + $0x30] sm:$0xff]  ;;  %v236_v12 = vld [vmem:[%s1044_s28 + $0x38] sm:$0xff]  ;;  %v237_v13 = vld [vmem:[%s1044_s28 + $0x40] sm:$0xff] }
  0x13   : > { %872 = vmatprep.mubr.msk.bf16.mxu0 %vm276_vm0, %v245_v5  ;;  %v238_v14 = vld [vmem:[%s1044_s28 + $0x48] sm:$0xff]  ;;  %v248_v15 = vpack.c.bf16 %v236_v12, %v235_v11  ;;  %v239_v17 = vld [vmem:[%s1044_s28 + $0x50] sm:$0xff]  ;;  %v240_v18 = vld [vmem:[%s1044_s28 + $0x58] sm:$0xff] }
  0x14   : > { %873 = vmatmul.mubr.msk.bf16.vlgmr.msra.gmra.mrb[0].mxu0 %vm276_vm0, %v246_v9  ;;  %v249_v16 = vpack.c.bf16 %v238_v14, %v237_v13  ;;  %v241_v19 = vld [vmem:[%s1044_s28 + $0x60] sm:$0xff]  ;;  %v242_v20 = vld [vmem:[%s1044_s28 + $0x68] sm:$0xff]  ;;  %v250_v21 = vpack.c.bf16 %v240_v18, %v239_v17  ;;  %v243_v23 = vld [vmem:[%s1044_s28 + $0x70] sm:$0xff] }
  0x15   : > { %876 = vmatprep.mubr.msk.bf16.mxu0 %vm276_vm0, %v247_v10  ;;  %v251_v22 = vpack.c.bf16 %v242_v20, %v241_v19  ;;  %v244_v24 = vld [vmem:[%s1044_s28 + $0x78] sm:$0xff] }
  0x16   : > { %v252_v25 = vpack.c.bf16 %v244_v24, %v243_v23 }
  0x1c   : > { %877 = vmatmul.mubr.msk.bf16.gmra.mrb[4].mxu0 %vm276_vm0, %v248_v15 }
  0x1d   : > { %880 = vmatprep.mubr.msk.bf16.mxu0 %vm276_vm0, %v249_v16 }
  0x24   : > { %881 = vmatmul.mubr.msk.bf16.gmra.mrb[8].mxu0 %vm276_vm0, %v250_v21  ;;  %v835_v21 = vld [vmem:[%s1296_s4] ss:$0 sm:$0xff] }
  0x25   : > { %884 = vmatprep.mubr.msk.bf16.mxu0 %vm276_vm0, %v251_v22 }
  0x2c   : > { %885 = vmatmul.mubr.msk.bf16.gmra.mrb[12].mxu0 %vm276_vm0, %v252_v25 }
  0xe7   : > { %v874_v29 = vpop.f32.mrb[0].mxu0 }
  0xe8   : > { %v344_v30 = vadd.f32 %v874_v29, %v824_v28  ;;  %v335_v31 = vpop.f32.mrb[1].mxu0 }
  0xe9   : > { %v336_v32 = vadd.f32 %v824_v28, %v335_v31  ;;  %v875_v33 = vpop.f32.mrb[2].mxu0 }
  0xea   : > { %v347_v34 = vadd.f32 %v875_v33, %v824_v28  ;;  %v338_v35 = vpop.f32.mrb[3].mxu0  ;;  %v400_v37 = vmax.f32 %v344_v30, 0.0 }
  0xeb   : > { %v339_v36 = vadd.f32 %v824_v28, %v338_v35  ;;  %v398_v39 = vmax.f32 %v336_v32, 0.0 }
  0xec   : > { %v401_v38 = vmax.f32 %v347_v34, 0.0 }
  0xed   : > { %v399_v40 = vmax.f32 %v339_v36, 0.0 }
  0xee   : > { %v415_v41 = vpack.c.bf16 %v401_v38, %v400_v37 }
  0xef   : > { %v878_v42 = vpop.f32.mrb[4].mxu0  ;;  %v414_v43 = vpack.c.bf16 %v399_v40, %v398_v39 }
  0xf0   : > { %v360_v44 = vadd.f32 %v878_v42, %v824_v28  ;;  %v351_v45 = vpop.f32.mrb[5].mxu0 }
  0xf1   : > { %v352_v46 = vadd.f32 %v824_v28, %v351_v45  ;;  %v879_v47 = vpop.f32.mrb[6].mxu0  ;;  %892 = vmatprep.mubr.msk.bf16.mxu1 %vm276_vm0, %v414_v43 }
  0xf2   : > { %v404_v48 = vmax.f32 %v360_v44, 0.0  ;;  %v363_v49 = vadd.f32 %v879_v47, %v824_v28  ;;  %v354_v50 = vpop.f32.mrb[7].mxu0  ;;  %893 = vmatmul.mubr.msk.bf16.vlgmr.msra.gmra.mrb[0].mxu1 %vm276_vm0, %v415_v41 }
  0xf3   : > { %v355_v51 = vadd.f32 %v824_v28, %v354_v50  ;;  %v402_v53 = vmax.f32 %v352_v46, 0.0 }
  0xf4   : > { %v405_v52 = vmax.f32 %v363_v49, 0.0 }
  0xf5   : > { %v403_v54 = vmax.f32 %v355_v51, 0.0 }
  0xf6   : > { %v417_v55 = vpack.c.bf16 %v405_v52, %v404_v48 }
  0xf7   : > { %v416_v56 = vpack.c.bf16 %v403_v54, %v402_v53  ;;  %v882_v57 = vpop.f32.mrb[8].mxu0 }
  0xf8   : > { %v376_v58 = vadd.f32 %v882_v57, %v824_v28  ;;  %v367_v59 = vpop.f32.mrb[9].mxu0 }
  0xf9   : > { %v368_v60 = vadd.f32 %v824_v28, %v367_v59  ;;  %v883_v61 = vpop.f32.mrb[10].mxu0  ;;  %896 = vmatprep.mubr.msk.bf16.mxu1 %vm276_vm0, %v416_v56 }
  0xfa   : > { %v408_v62 = vmax.f32 %v376_v58, 0.0  ;;  %v379_v63 = vadd.f32 %v883_v61, %v824_v28  ;;  %v370_v0 = vpop.f32.mrb[11].mxu0  ;;  %897 = vmatmul.mubr.msk.bf16.gmra.mrb[4].mxu1 %vm276_vm0, %v417_v55 }
  0xfb   : > { %v371_v1 = vadd.f32 %v824_v28, %v370_v0  ;;  %v406_v3 = vmax.f32 %v368_v60, 0.0 }
  0xfc   : > { %v409_v2 = vmax.f32 %v379_v63, 0.0 }
  0xfd   : > { %v407_v4 = vmax.f32 %v371_v1, 0.0 }
  0xfe   : > { %v419_v5 = vpack.c.bf16 %v409_v2, %v408_v62 }
  0xff   : > { %v418_v6 = vpack.c.bf16 %v407_v4, %v406_v3  ;;  %v886_v7 = vpop.f32.mrb[12].mxu0 }
 0x100   : > { %v392_v8 = vadd.f32 %v886_v7, %v824_v28  ;;  %v383_v9 = vpop.f32.mrb[13].mxu0 }
 0x101   : > { %v384_v10 = vadd.f32 %v824_v28, %v383_v9  ;;  %v887_v11 = vpop.f32.mrb[14].mxu0  ;;  %900 = vmatprep.mubr.msk.bf16.mxu1 %vm276_vm0, %v418_v6 }
 0x102   : > { %v412_v12 = vmax.f32 %v392_v8, 0.0  ;;  %v395_v13 = vadd.f32 %v887_v11, %v824_v28  ;;  %v386_v14 = vpop.f32.mrb[15].mxu0  ;;  %901 = vmatmul.mubr.msk.bf16.gmra.mrb[8].mxu1 %vm276_vm0, %v419_v5 }
 0x103   : > { %v387_v15 = vadd.f32 %v824_v28, %v386_v14  ;;  %v410_v17 = vmax.f32 %v384_v10, 0.0 }
 0x104   : > { %v413_v16 = vmax.f32 %v395_v13, 0.0 }
 0x105   : > { %v411_v18 = vmax.f32 %v387_v15, 0.0 }
 0x106   : > { %v421_v19 = vpack.c.bf16 %v413_v16, %v412_v12 }
 0x107   : > { %v420_v20 = vpack.c.bf16 %v411_v18, %v410_v17 }
 0x109   : > { %904 = vmatprep.mubr.msk.bf16.mxu1 %vm276_vm0, %v420_v20 }
 0x10a   : > { %905 = vmatmul.mubr.msk.bf16.gmra.mrb[12].mxu1 %vm276_vm0, %v421_v19 }
 0x1c5   : > { %v894_v22 = vpop.f32.mrb[0].mxu1 }
 0x1c6   : > { %v1090_v23 = vadd.f32 %v894_v22, %v835_v21  ;;  %v503_v24 = vpop.f32.mrb[1].mxu1 }
 0x1c7   : > { %v1092_v25 = vadd.f32 %v835_v21, %v503_v24  ;;  %v895_v26 = vpop.f32.mrb[2].mxu1 }
 0x1c8   : > { %v1094_v27 = vadd.f32 %v895_v26, %v835_v21  ;;  %v506_v28 = vpop.f32.mrb[3].mxu1  ;;  %v573_v29 = vsel %vm566_vm1, %v1090_v23, -inf }
 0x1c9   : > { %v1098_v30 = vadd.f32 %v835_v21, %v506_v28  ;;  %574 = vmax.xlane.f32.xlu1 %v573_v29  ;;  %v567_v31 = vsel %vm566_vm1, %v1092_v25, -inf }
 0x1ca   : > { %568 = vmax.xlane.f32.xlu0 %v567_v31  ;;  %v576_v32 = vsel %vm566_vm1, %v1094_v27, -inf }
 0x1cb   : > { %v570_v34 = vsel %vm566_vm1, %v1098_v30, -inf }
 0x1cd   : > { %577 = vmax.xlane.f32.xlu1 %v576_v32  ;;  %v898_v33 = vpop.f32.mrb[4].mxu1 }
 0x1ce   : > { %v1106_v35 = vadd.f32 %v898_v33, %v835_v21  ;;  %v519_v36 = vpop.f32.mrb[5].mxu1  ;;  %571 = vmax.xlane.f32.xlu0 %v570_v34 }
 0x1cf   : > { %v899_v37 = vpop.f32.mrb[6].mxu1  ;;  %v1112_v41 = vadd.f32 %v835_v21, %v519_v36 }
 0x1d0   : > { %v1108_v38 = vadd.f32 %v899_v37, %v835_v21  ;;  %v522_v39 = vpop.f32.mrb[7].mxu1  ;;  %v585_v40 = vsel %vm566_vm1, %v1106_v35, -inf }
 0x1d1   : > { %v1114_v42 = vadd.f32 %v835_v21, %v522_v39  ;;  %v579_v45 = vsel %vm566_vm1, %v1112_v41, -inf }
 0x1d2   : > { %586 = vmax.xlane.f32.xlu0 %v585_v40  ;;  %v588_v43 = vsel %vm566_vm1, %v1108_v38, -inf }
 0x1d3   : > { %589 = vmax.xlane.f32.xlu1 %v588_v43  ;;  %v582_v48 = vsel %vm566_vm1, %v1114_v42, -inf }
 0x1d5   : > { %v902_v44 = vpop.f32.mrb[8].mxu1 }
 0x1d6   : > { %v1120_v46 = vadd.f32 %v902_v44, %v835_v21  ;;  %v535_v47 = vpop.f32.mrb[9].mxu1  ;;  %580 = vmax.xlane.f32.xlu0 %v579_v45 }
 0x1d7   : > { %v903_v49 = vpop.f32.mrb[10].mxu1  ;;  %583 = vmax.xlane.f32.xlu1 %v582_v48  ;;  %v1128_v53 = vadd.f32 %v835_v21, %v535_v47 }
 0x1d8   : > { %v1124_v50 = vadd.f32 %v903_v49, %v835_v21  ;;  %v538_v51 = vpop.f32.mrb[11].mxu1  ;;  %v597_v52 = vsel %vm566_vm1, %v1120_v46, -inf }
 0x1d9   : > { %v1130_v54 = vadd.f32 %v835_v21, %v538_v51  ;;  %v591_v57 = vsel %vm566_vm1, %v1128_v53, -inf }
 0x1da   : > { %598 = vmax.xlane.f32.xlu0 %v597_v52  ;;  %v600_v55 = vsel %vm566_vm1, %v1124_v50, -inf }
 0x1db   : > { %601 = vmax.xlane.f32.xlu1 %v600_v55  ;;  %v594_v59 = vsel %vm566_vm1, %v1130_v54, -inf }
 0x1dd   : > { %v906_v56 = vpop.f32.mrb[12].mxu1 }
 0x1de   : > { %v551_v58 = vpop.f32.mrb[13].mxu1  ;;  %592 = vmax.xlane.f32.xlu0 %v591_v57  ;;  %v1140_v63 = vadd.f32 %v906_v56, %v835_v21 }
 0x1df   : > { %v1138_v60 = vadd.f32 %v835_v21, %v551_v58  ;;  %v907_v61 = vpop.f32.mrb[14].mxu1  ;;  %595 = vmax.xlane.f32.xlu1 %v594_v59 }
 0x1e0   : > { %v554_v62 = vpop.f32.mrb[15].mxu1  ;;  %v1146_v2 = vadd.f32 %v907_v61, %v835_v21  ;;  %v609_v4 = vsel %vm566_vm1, %v1140_v63, -inf }
 0x1e1   : > { %v1142_v0 = vadd.f32 %v835_v21, %v554_v62  ;;  %v603_v1 = vsel %vm566_vm1, %v1138_v60, -inf }
 0x1e2   : > { %604 = vmax.xlane.f32.xlu0 %v603_v1  ;;  %v612_v5 = vsel %vm566_vm1, %v1146_v2, -inf }
 0x1e3   : > { %v606_v3 = vsel %vm566_vm1, %v1142_v0, -inf }
 0x1e4   : > { %607 = vmax.xlane.f32.xlu1 %v606_v3 }
 0x1e6   : > { %610 = vmax.xlane.f32.xlu0 %v609_v4 }
 0x1e8   : > { %613 = vmax.xlane.f32.xlu1 %v612_v5 }
 0x256   : > { %v575_v6 = vpop.xlane.xlu1 %574 }
 0x257   : > { %v617_v7 = vsub.f32 %v1090_v23, %v575_v6  ;;  %v569_v8 = vpop.xlane.xlu0 %568 }
 0x258   : > { %v615_v9 = vsub.f32 %v1092_v25, %v569_v8 }
 0x259   : > { %v635_v10 = vmul.f32 1.442695, %v617_v7 }
 0x25a   : > { %v631_v11 = vmul.f32 1.442695, %v615_v9  ;;  %v578_v12 = vpop.xlane.xlu1 %577 }
 0x25b   : > { %920 = vpow2.f32 %v635_v10  ;;  %v618_v13 = vsub.f32 %v1094_v27, %v578_v12  ;;  %v572_v14 = vpop.xlane.xlu0 %571 }
 0x25c   : > { %v616_v15 = vsub.f32 %v1098_v30, %v572_v14  ;;  %922 = vpow2.f32 %v631_v11 }
 0x25d   : > { %v637_v16 = vmul.f32 1.442695, %v618_v13 }
 0x25e   : > { %v633_v17 = vmul.f32 1.442695, %v616_v15 }
 0x25f   : > { %924 = vpow2.f32 %v637_v16  ;;  %v587_v18 = vpop.xlane.xlu0 %586 }
 0x260   : > { %v621_v19 = vsub.f32 %v1106_v35, %v587_v18  ;;  %v590_v20 = vpop.xlane.xlu1 %589  ;;  %926 = vpow2.f32 %v633_v17 }
 0x261   : > { %v622_v21 = vsub.f32 %v1108_v38, %v590_v20 }
 0x262   : > { %v643_v22 = vmul.f32 1.442695, %v621_v19 }
 0x263   : > { %v645_v23 = vmul.f32 1.442695, %v622_v21  ;;  %v581_v24 = vpop.xlane.xlu0 %580 }
 0x264   : > { %928 = vpow2.f32 %v643_v22  ;;  %v619_v25 = vsub.f32 %v1112_v41, %v581_v24  ;;  %v584_v26 = vpop.xlane.xlu1 %583 }
 0x265   : > { %v1161_v27 = vpop.eup %920  ;;  %930 = vpow2.f32 %v645_v23  ;;  %v620_v28 = vsub.f32 %v1114_v42, %v584_v26 }
 0x266   : > { %v639_v29 = vmul.f32 1.442695, %v619_v25  ;;  %v669_v30 = vsel %vm566_vm1, %v1161_v27, 0.0  ;;  %v1166_v31 = vpop.eup %922 }
 0x267   : > { %v641_v32 = vmul.f32 1.442695, %v620_v28  ;;  %670 = vadd.xlane.f32.xlu0 %v669_v30  ;;  %v599_v33 = vpop.xlane.xlu0 %598  ;;  %v663_v40 = vsel %vm566_vm1, %v1166_v31, 0.0 }
 0x268   : > { %932 = vpow2.f32 %v639_v29  ;;  %v625_v34 = vsub.f32 %v1120_v46, %v599_v33  ;;  %v602_v35 = vpop.xlane.xlu1 %601 }
 0x269   : > { %v1169_v36 = vpop.eup %924  ;;  %934 = vpow2.f32 %v641_v32  ;;  %v626_v37 = vsub.f32 %v1124_v50, %v602_v35 }
 0x26a   : > { %v651_v38 = vmul.f32 1.442695, %v625_v34  ;;  %v672_v39 = vsel %vm566_vm1, %v1169_v36, 0.0  ;;  %v1176_v41 = vpop.eup %926 }
 0x26b   : > { %v653_v42 = vmul.f32 1.442695, %v626_v37  ;;  %673 = vadd.xlane.f32.xlu1 %v672_v39  ;;  %664 = vadd.xlane.f32.xlu0 %v663_v40  ;;  %v593_v43 = vpop.xlane.xlu0 %592  ;;  %v666_v49 = vsel %vm566_vm1, %v1176_v41, 0.0 }
 0x26c   : > { %936 = vpow2.f32 %v651_v38  ;;  %v623_v44 = vsub.f32 %v1128_v53, %v593_v43  ;;  %v596_v45 = vpop.xlane.xlu1 %595 }
 0x26d   : > { %938 = vpow2.f32 %v653_v42  ;;  %v624_v46 = vsub.f32 %v1130_v54, %v596_v45 }
 0x26e   : > { %v1180_v47 = vpop.eup %928  ;;  %v647_v48 = vmul.f32 1.442695, %v623_v44 }
 0x26f   : > { %v1184_v50 = vpop.eup %930  ;;  %v649_v51 = vmul.f32 1.442695, %v624_v46  ;;  %667 = vadd.xlane.f32.xlu1 %v666_v49  ;;  %v605_v52 = vpop.xlane.xlu0 %604  ;;  %v681_v55 = vsel %vm566_vm1, %v1180_v47, 0.0 }
 0x270   : > { %940 = vpow2.f32 %v647_v48  ;;  %v627_v53 = vsub.f32 %v1138_v60, %v605_v52  ;;  %682 = vadd.xlane.f32.xlu0 %v681_v55  ;;  %v684_v59 = vsel %vm566_vm1, %v1184_v50, 0.0 }
 0x271   : > { %942 = vpow2.f32 %v649_v51  ;;  %v608_v54 = vpop.xlane.xlu1 %607 }
 0x272   : > { %v1189_v56 = vpop.eup %932  ;;  %v655_v57 = vmul.f32 1.442695, %v627_v53  ;;  %v628_v58 = vsub.f32 %v1142_v0, %v608_v54 }
 0x273   : > { %v1194_v61 = vpop.eup %934  ;;  %685 = vadd.xlane.f32.xlu1 %v684_v59  ;;  %v611_v62 = vpop.xlane.xlu0 %610  ;;  %v675_v1 = vsel %vm566_vm1, %v1189_v56, 0.0 }
 0x274   : > { %944 = vpow2.f32 %v655_v57  ;;  %v657_v60 = vmul.f32 1.442695, %v628_v58  ;;  %v629_v3 = vsub.f32 %v1140_v63, %v611_v62  ;;  %676 = vadd.xlane.f32.xlu0 %v675_v1  ;;  %v678_v7 = vsel %vm566_vm1, %v1194_v61, 0.0 }
 0x275   : > { %v614_v4 = vpop.xlane.xlu1 %613 }
 0x276   : > { %v1199_v5 = vpop.eup %936  ;;  %946 = vpow2.f32 %v657_v60  ;;  %v659_v0 = vmul.f32 1.442695, %v629_v3  ;;  %v630_v6 = vsub.f32 %v1146_v2, %v614_v4 }
 0x277   : > { %v1204_v8 = vpop.eup %938  ;;  %679 = vadd.xlane.f32.xlu1 %v678_v7  ;;  %v693_v9 = vsel %vm566_vm1, %v1199_v5, 0.0 }
 0x278   : > { %948 = vpow2.f32 %v659_v0  ;;  %v661_v10 = vmul.f32 1.442695, %v630_v6  ;;  %694 = vadd.xlane.f32.xlu0 %v693_v9  ;;  %v696_v11 = vsel %vm566_vm1, %v1204_v8, 0.0 }
 0x27a   : > { %v1208_v63 = vpop.eup %940  ;;  %950 = vpow2.f32 %v661_v10 }
 0x27b   : > { %v1212_v12 = vpop.eup %942  ;;  %697 = vadd.xlane.f32.xlu1 %v696_v11  ;;  %v687_v2 = vsel %vm566_vm1, %v1208_v63, 0.0 }
 0x27c   : > { %688 = vadd.xlane.f32.xlu0 %v687_v2  ;;  %v690_v14 = vsel %vm566_vm1, %v1212_v12, 0.0 }
 0x27e   : > { %v1216_v13 = vpop.eup %944 }
 0x27f   : > { %691 = vadd.xlane.f32.xlu1 %v690_v14  ;;  %v699_v15 = vsel %vm566_vm1, %v1216_v13, 0.0 }
 0x280   : > { %v1222_v16 = vpop.eup %946  ;;  %700 = vadd.xlane.f32.xlu0 %v699_v15 }
 0x281   : > { %v702_v17 = vsel %vm566_vm1, %v1222_v16, 0.0 }
 0x282   : > { %v1226_v18 = vpop.eup %948 }
 0x283   : > { %703 = vadd.xlane.f32.xlu1 %v702_v17  ;;  %v705_v19 = vsel %vm566_vm1, %v1226_v18, 0.0 }
 0x284   : > { %v1230_v20 = vpop.eup %950  ;;  %706 = vadd.xlane.f32.xlu0 %v705_v19 }
 0x285   : > { %v708_v21 = vsel %vm566_vm1, %v1230_v20, 0.0 }
 0x287   : > { %709 = vadd.xlane.f32.xlu1 %v708_v21 }
 0x2f4   : > { %v671_v22 = vpop.xlane.xlu0 %670 }
 0x2f5   : > { %952 = vrcp.f32 %v671_v22 }
 0x2f8   : > { %v674_v23 = vpop.xlane.xlu1 %673  ;;  %v665_v24 = vpop.xlane.xlu0 %664 }
 0x2f9   : > { %954 = vrcp.f32 %v674_v23 }
 0x2fa   : > { %956 = vrcp.f32 %v665_v24 }
 0x2fc   : > { %v668_v25 = vpop.xlane.xlu1 %667 }
 0x2fd   : > { %958 = vrcp.f32 %v668_v25  ;;  %v683_v26 = vpop.xlane.xlu0 %682 }
 0x2fe   : > { %960 = vrcp.f32 %v683_v26 }
 0x2ff   : > { %v953_v28 = vpop.eup %952 }
 0x300   : > { %v729_v29 = vmul.f32 %v953_v28, %v1161_v27  ;;  %v686_v30 = vpop.xlane.xlu1 %685 }
 0x301   : > { %962 = vrcp.f32 %v686_v30  ;;  %v677_v32 = vpop.xlane.xlu0 %676 }
 0x302   : > { %745 = vst.msk [vmem:[%s1239_s14 + $0x10] sm:$0xff] %vm566_vm1, %v729_v29  ;;  %964 = vrcp.f32 %v677_v32 }
 0x303   : > { %v955_v33 = vpop.eup %954 }
 0x304   : > { %v957_v34 = vpop.eup %956  ;;  %v730_v35 = vmul.f32 %v955_v33, %v1169_v36  ;;  %v680_v37 = vpop.xlane.xlu1 %679 }
 0x305   : > { %v727_v38 = vmul.f32 %v957_v34, %v1166_v31  ;;  %966 = vrcp.f32 %v680_v37  ;;  %v695_v39 = vpop.xlane.xlu0 %694 }
 0x306   : > { %746 = vst.msk [vmem:[%s1239_s14 + $0x18] sm:$0xff] %vm566_vm1, %v730_v35  ;;  %968 = vrcp.f32 %v695_v39 }
 0x307   : > { %v959_v27 = vpop.eup %958  ;;  %743 = vst.msk [vmem:[%s1239_s14] sm:$0xff] %vm566_vm1, %v727_v38 }
 0x308   : > { %v961_v40 = vpop.eup %960  ;;  %v728_v42 = vmul.f32 %v959_v27, %v1176_v41  ;;  %v698_v43 = vpop.xlane.xlu1 %697 }
 0x309   : > { %v733_v44 = vmul.f32 %v961_v40, %v1180_v47  ;;  %970 = vrcp.f32 %v698_v43  ;;  %v689_v36 = vpop.xlane.xlu0 %688 }
 0x30a   : > { %744 = vst.msk [vmem:[%s1239_s14 + $0x8] sm:$0xff] %vm566_vm1, %v728_v42  ;;  %972 = vrcp.f32 %v689_v36 }
 0x30b   : > { %v963_v31 = vpop.eup %962  ;;  %749 = vst.msk [vmem:[%s1239_s14 + $0x30] sm:$0xff] %vm566_vm1, %v733_v44 }
 0x30c   : > { %v965_v45 = vpop.eup %964  ;;  %v734_v46 = vmul.f32 %v963_v31, %v1184_v50  ;;  %v692_v48 = vpop.xlane.xlu1 %691 }
 0x30d   : > { %v731_v49 = vmul.f32 %v965_v45, %v1189_v56  ;;  %974 = vrcp.f32 %v692_v48  ;;  %v701_v41 = vpop.xlane.xlu0 %700 }
 0x30e   : > { %750 = vst.msk [vmem:[%s1239_s14 + $0x38] sm:$0xff] %vm566_vm1, %v734_v46  ;;  %976 = vrcp.f32 %v701_v41 }
 0x30f   : > { %v967_v47 = vpop.eup %966  ;;  %747 = vst.msk [vmem:[%s1239_s14 + $0x20] sm:$0xff] %vm566_vm1, %v731_v49 }
 0x310   : > { %v969_v51 = vpop.eup %968  ;;  %v732_v52 = vmul.f32 %v967_v47, %v1194_v61  ;;  %v704_v55 = vpop.xlane.xlu1 %703 }
 0x311   : > { %v737_v50 = vmul.f32 %v969_v51, %v1199_v5  ;;  %978 = vrcp.f32 %v704_v55  ;;  %v707_v53 = vpop.xlane.xlu0 %706 }
 0x312   : > { %748 = vst.msk [vmem:[%s1239_s14 + $0x28] sm:$0xff] %vm566_vm1, %v732_v52  ;;  %980 = vrcp.f32 %v707_v53 }
 0x313   : > { %v971_v54 = vpop.eup %970  ;;  %753 = vst.msk [vmem:[%s1239_s14 + $0x50] sm:$0xff] %vm566_vm1, %v737_v50 }
 0x314   : > { %v973_v56 = vpop.eup %972  ;;  %v738_v57 = vmul.f32 %v971_v54, %v1204_v8  ;;  %v710_v58 = vpop.xlane.xlu1 %709 }
 0x315   : > { %v735_v59 = vmul.f32 %v973_v56, %v1208_v63  ;;  %982 = vrcp.f32 %v710_v58 }
 0x316   : > { %754 = vst.msk [vmem:[%s1239_s14 + $0x58] sm:$0xff] %vm566_vm1, %v738_v57 }
 0x317   : > { %v975_v61 = vpop.eup %974  ;;  %751 = vst.msk [vmem:[%s1239_s14 + $0x40] sm:$0xff] %vm566_vm1, %v735_v59 }
 0x318   : > { %v977_v62 = vpop.eup %976  ;;  %v736_v1 = vmul.f32 %v975_v61, %v1212_v12 }
 0x319   : > { %v739_v60 = vmul.f32 %v977_v62, %v1216_v13 }
 0x31a   : > { %752 = vst.msk [vmem:[%s1239_s14 + $0x48] sm:$0xff] %vm566_vm1, %v736_v1 }
 0x31b   : > { %v979_v3 = vpop.eup %978  ;;  %755 = vst.msk [vmem:[%s1239_s14 + $0x60] sm:$0xff] %vm566_vm1, %v739_v60 }
 0x31c   : > { %v981_v4 = vpop.eup %980  ;;  %v740_v5 = vmul.f32 %v979_v3, %v1222_v16 }
 0x31d   : > { %v741_v0 = vmul.f32 %v981_v4, %v1226_v18 }
 0x31e   : > { %756 = vst.msk [vmem:[%s1239_s14 + $0x68] sm:$0xff] %vm566_vm1, %v740_v5 }
 0x31f   : > { %v983_v6 = vpop.eup %982  ;;  %757 = vst.msk [vmem:[%s1239_s14 + $0x70] sm:$0xff] %vm566_vm1, %v741_v0 }
 0x320   : > { %v742_v7 = vmul.f32 %v983_v6, %v1230_v20 }
 0x322   : > { %758 = vst.msk [vmem:[%s1239_s14 + $0x78] sm:$0xff] %vm566_vm1, %v742_v7 }
 0x323 PF: > { %s15_s18 = sadd.s32 1, %s990_s18  }
 0x324   : > { %p12_p4 = scmp.ge.s32.totalorder %s15_s18, 6  }
 0x326   :  { %14 = sbr.rel (!%p12_p4) target bundleno = 1 (0x1), region = 70 }

</bundles_post_ra>
